<compile_context>
chip_gen: v7x
topology: tpu7x:2x2x1
jax: 0.10.0
libtpu: 0.0.40
codegen_flags: <defaults>
</compile_context>

<pallas_src>
import functools

import jax
import jax.numpy as jnp
from jax import lax
from jax.experimental import pallas as pl
from jax.experimental.pallas import tpu as pltpu


# ----------------------------------------------------------------------------
# Fast path: whole sequence fits in one tile -> plain softmax, no scratch.
# ----------------------------------------------------------------------------
def _agg_kernel_single(x_ref, theta_ref, o_ref):
    # x_ref:     (TB, S, Hp)   batch tile with the full sequence resident
    # theta_ref: (Hp, K)       shared parameter
    # o_ref:     (TB, K, Hp)   output tile
    TB, S, Hp = x_ref.shape
    K = theta_ref.shape[1]

    x = x_ref[...]                       # (TB, S, Hp), input dtype
    theta = theta_ref[...]               # (Hp, K)

    # scores = x @ theta on the MXU, flattened so the M dim is TB*S
    scores = jnp.dot(x.reshape(TB * S, Hp), theta,
                     preferred_element_type=jnp.float32).reshape(TB, S, K)

    # softmax over the sequence axis (dim=-2 of the [B, S, K] scores)
    m = jnp.max(scores, axis=1, keepdims=True)            # (TB, 1, K)
    p = jnp.exp(scores - m)                                # (TB, S, K), f32
    l = jnp.sum(p, axis=1)                                 # (TB, K)

    # result[b, k, :] = sum_s p[b, s, k] * x[b, s, :], normalized by l
    acc = jnp.einsum('bsk,bsh->bkh', p.astype(x.dtype), x,
                     preferred_element_type=jnp.float32)   # (TB, K, Hp)
    inv_l = pl.reciprocal(l, approx=False)                 # (TB, K)
    o_ref[...] = (acc * inv_l[:, :, None]).astype(o_ref.dtype)


# ----------------------------------------------------------------------------
# Scalable path: sequence tiled, online (flash-style) softmax over seq tiles.
# ----------------------------------------------------------------------------
def _agg_kernel_online(x_ref, theta_ref, o_ref, m_ref, l_ref, acc_ref, *, seq_len):
    # x_ref:     (TB, TS, Hp)   current batch/seq tile
    # theta_ref: (Hp, K)        shared parameter
    # o_ref:     (TB, K, Hp)    output tile (resident across the seq axis)
    # m_ref:     (TB, K) f32    running max      (scratch)
    # l_ref:     (TB, K) f32    running sum      (scratch)
    # acc_ref:   (TB, K, Hp) f32 running result  (scratch)
    s_idx = pl.program_id(1)
    TB, TS, Hp = x_ref.shape
    K = theta_ref.shape[1]

    @pl.when(s_idx == 0)
    def _init():
        m_ref[...] = jnp.full_like(m_ref, -jnp.inf)
        l_ref[...] = jnp.zeros_like(l_ref)
        acc_ref[...] = jnp.zeros_like(acc_ref)

    x = x_ref[...]                      # (TB, TS, Hp), input dtype
    theta = theta_ref[...]              # (Hp, K)

    needs_seq_mask = (seq_len % TS) != 0   # static (compile-time) flag
    if needs_seq_mask:
        row = s_idx * TS + lax.broadcasted_iota(jnp.int32, (1, TS, 1), 1)
        valid = row < seq_len           # (1, TS, 1)
        # zero padded rows so 0 * (garbage) cannot poison the accumulator
        x = jnp.where(valid, x, jnp.zeros_like(x))

    # scores = x @ theta on the MXU, flattened so the M dim is TB*TS
    scores = jnp.dot(x.reshape(TB * TS, Hp), theta,
                     preferred_element_type=jnp.float32).reshape(TB, TS, K)
    if needs_seq_mask:
        scores = jnp.where(valid, scores, -jnp.inf)

    # online softmax over the sequence axis
    m_prev = m_ref[...]                                   # (TB, K)
    m_new = jnp.maximum(m_prev, jnp.max(scores, axis=1))  # (TB, K)
    alpha = jnp.exp(m_prev - m_new)                       # (TB, K)
    p = jnp.exp(scores - m_new[:, None, :])               # (TB, TS, K), f32
    l_ref[...] = alpha * l_ref[...] + jnp.sum(p, axis=1)

    # result[b, k, :] += sum_s p[b, s, k] * x[b, s, :]
    pv = jnp.einsum('bsk,bsh->bkh', p.astype(x.dtype), x,
                    preferred_element_type=jnp.float32)   # (TB, K, Hp)
    acc_ref[...] = alpha[:, :, None] * acc_ref[...] + pv
    m_ref[...] = m_new

    @pl.when(s_idx == pl.num_programs(1) - 1)
    def _finalize():
        inv_l = pl.reciprocal(l_ref[...], approx=False)   # (TB, K)
        o_ref[...] = (acc_ref[...] * inv_l[:, :, None]).astype(o_ref.dtype)


# ----------------------------------------------------------------------------
# Wrapper
# ----------------------------------------------------------------------------
def _vmem_limit_bytes():
    """~Half of physical VMEM (v5e/v6e: 64 MiB of 128; v7x: 32 MiB of 64)."""
    default_cap = 128 * 1024 * 1024
    try:
        info = pltpu.get_tpu_info()
        cap = getattr(info, "vmem_capacity_bytes", None)
    except Exception:
        cap = None
    cap = cap or default_cap
    return int(min(cap // 2, 96 * 1024 * 1024))


def _pick_tiles(B, S, Hp, K, itemsize, budget):
    """Choose (TB, TS) so the double-buffered working set fits in `budget`."""
    Kp = max(K, 128)   # lane padding of (.., K) intermediates
    Ko = max(K, 8)     # sublane padding of the (TB, K, Hp) result

    def step_bytes(tb, ts):
        x_in = 2 * tb * ts * Hp * itemsize              # double-buffered input
        theta_in = 2 * Hp * Kp * itemsize
        out = 2 * tb * Ko * Hp * itemsize               # double-buffered output
        scratch = tb * Ko * Hp * 4 + 2 * tb * Kp * 4    # acc + m + l
        temps = tb * ts * Hp * itemsize + 3 * tb * ts * Kp * 4
        return x_in + theta_in + out + scratch + temps

    # Sequence tile: whole sequence resident when it fits; otherwise tile it
    # (multiple of 8 sublanes) and rely on the online softmax.
    ts = S
    if step_bytes(1, S) > budget:
        ts = max(8, (min(S, 1024) // 8) * 8)
        while ts > 8 and step_bytes(1, ts) > budget:
            ts = max(8, ((ts // 2) // 8) * 8)

    # Batch tile: grow while it fits, but keep >= 2 batch blocks so the grid
    # can shard across TensorCores (v7x megacore).
    tb = 1
    while tb * 2 <= max(1, B // 2) and step_bytes(tb * 2, ts) <= budget:
        tb *= 2
    return min(tb, B), min(ts, S)


def item_to_interest_aggregation(x, theta, *, block_b=None, block_s=None):
    """x: [B, S, H], theta: [H, K] -> [B, K, H] (same dtype as x).

    Pass bf16 x/theta to halve HBM traffic; softmax math stays in f32.
    """
    B, S, H = x.shape
    Ht, K = theta.shape
    assert Ht == H
    out_dtype = x.dtype
    itemsize = jnp.dtype(x.dtype).itemsize

    # Pad hidden to a multiple of 128 so the (K, H) output is lane-dense.
    # Exact: zero-padded x columns / theta rows contribute 0 to both matmuls.
    Hp = -(-H // 128) * 128
    if Hp != H:
        x = jnp.pad(x, ((0, 0), (0, 0), (0, Hp - H)))
        theta = jnp.pad(theta, ((0, Hp - H), (0, 0)))

    vmem_limit = _vmem_limit_bytes()
    auto_tb, auto_ts = _pick_tiles(B, S, Hp, K, itemsize, int(vmem_limit * 0.6))
    TB = min(block_b if block_b is not None else auto_tb, B)
    TS = min(block_s if block_s is not None else auto_ts, S)
    if TS < S:
        TS = max(8, (TS // 8) * 8)  # second-minor block dim: multiple of 8

    single_seq_tile = (TS == S)

    compiler_params_common = dict(vmem_limit_bytes=vmem_limit)
    cost = pl.CostEstimate(
        flops=4 * B * S * Hp * K,
        transcendentals=B * S * K,
        bytes_accessed=(B * S * Hp + Hp * K) * itemsize
                       + B * K * Hp * jnp.dtype(out_dtype).itemsize,
    )

    if single_seq_tile:
        grid = (pl.cdiv(B, TB),)
        out = pl.pallas_call(
            _agg_kernel_single,
            out_shape=jax.ShapeDtypeStruct((B, K, Hp), out_dtype),
            grid_spec=pltpu.PrefetchScalarGridSpec(
                num_scalar_prefetch=0,
                grid=grid,
                in_specs=[
                    pl.BlockSpec((TB, S, Hp), lambda b: (b, 0, 0)),
                    pl.BlockSpec((Hp, K), lambda b: (0, 0)),
                ],
                out_specs=pl.BlockSpec((TB, K, Hp), lambda b: (b, 0, 0)),
            ),
            compiler_params=pltpu.CompilerParams(
                dimension_semantics=("parallel",),
                **compiler_params_common,
            ),
            cost_estimate=cost,
        )(x, theta)
    else:
        grid = (pl.cdiv(B, TB), pl.cdiv(S, TS))
        out = pl.pallas_call(
            functools.partial(_agg_kernel_online, seq_len=S),
            out_shape=jax.ShapeDtypeStruct((B, K, Hp), out_dtype),
            grid_spec=pltpu.PrefetchScalarGridSpec(
                num_scalar_prefetch=0,
                grid=grid,
                in_specs=[
                    pl.BlockSpec((TB, TS, Hp), lambda b, s: (b, s, 0)),
                    pl.BlockSpec((Hp, K), lambda b, s: (0, 0)),
                ],
                out_specs=pl.BlockSpec((TB, K, Hp), lambda b, s: (b, 0, 0)),
                scratch_shapes=[
                    pltpu.VMEM((TB, K), jnp.float32),      # running max
                    pltpu.VMEM((TB, K), jnp.float32),      # running sum
                    pltpu.VMEM((TB, K, Hp), jnp.float32),  # f32 accumulator
                ],
            ),
            compiler_params=pltpu.CompilerParams(
                dimension_semantics=("parallel", "arbitrary"),
                **compiler_params_common,
            ),
            cost_estimate=cost,
        )(x, theta)

    if Hp != H:
        out = out[:, :, :H]
    return out


def _reference(x, theta):
    d = jax.nn.softmax(jnp.einsum("nsh,hk->nsk", x, theta), axis=-2)
    return jnp.einsum("nij,nik->nkj", x, d)


if __name__ == "__main__":
    key = jax.random.PRNGKey(0)
    kx, kt, kx2, kt2 = jax.random.split(key, 4)

    # 1) Module-sized check (seq_len=8, hidden=32, k_interests=5) -> fast path.
    B, S, H, K = 2, 8, 32, 5
    x = jax.random.normal(kx, (B, S, H), dtype=jnp.float32)
    theta = jax.random.normal(kt, (H, K), dtype=jnp.float32)  # randn([hidden, k]) as in __init__
    out = jax.block_until_ready(item_to_interest_aggregation(x, theta))
    ref = _reference(x, theta)
    assert out.shape == (B, K, H)
    assert jnp.allclose(out, ref, atol=1e-5, rtol=1e-5)

    # 2) Force the scalable path: batch blocking with a partial last block,
    #    seq tiling with online softmax + masking, and hidden padding 96->128.
    B2, S2, H2, K2 = 3, 40, 96, 5
    x2 = jax.random.normal(kx2, (B2, S2, H2), dtype=jnp.float32)
    theta2 = jax.random.normal(kt2, (H2, K2), dtype=jnp.float32)
    out2 = jax.block_until_ready(
        item_to_interest_aggregation(x2, theta2, block_b=2, block_s=16))
    ref2 = _reference(x2, theta2)
    assert out2.shape == (B2, K2, H2)
    assert jnp.allclose(out2, ref2, atol=1e-4, rtol=1e-4)

    print("KERNEL_OK")
</pallas_src>

<mosaic_0001>
module attributes {stable_mosaic.version = 11 : i64} {
  func.func @_agg_kernel_single(%arg0: i32, %arg1: memref<1x8x128xf32, #tpu.memory_space<vmem>>, %arg2: memref<128x5xf32, #tpu.memory_space<vmem>>, %arg3: memref<1x5x128xf32, #tpu.memory_space<vmem>>) attributes {dimension_semantics = [#tpu.dimension_semantics<parallel>], iteration_bounds = array<i64: 2>, scalar_prefetch = 0 : i64, scratch_operands = 0 : i64, tpu.core_type = #tpu.core_type<tc>, window_params = [{transform_indices = @transform_0, window_bounds = array<i64: 1, 8, 128>}, {pipeline_mode = #tpu.pipeline_mode<synchronous>, transform_indices = @transform_1, window_bounds = array<i64: 128, 5>}, {transform_indices = @transform_2, window_bounds = array<i64: 1, 5, 128>}]} {
    %c0 = arith.constant 0 : index
    %c0_0 = arith.constant 0 : index
    %c0_1 = arith.constant 0 : index
    %0 = vector.load %arg1[%c0, %c0_0, %c0_1] : memref<1x8x128xf32, #tpu.memory_space<vmem>>, vector<1x8x128xf32>
    %c0_2 = arith.constant 0 : index
    %c0_3 = arith.constant 0 : index
    %1 = vector.load %arg2[%c0_2, %c0_3] : memref<128x5xf32, #tpu.memory_space<vmem>>, vector<128x5xf32>
    %2 = vector.shape_cast %0 : vector<1x8x128xf32> to vector<8x128xf32>
    %cst = arith.constant dense<0.000000e+00> : vector<8x5xf32>
    %3 = tpu.matmul %2, %1, %cst {dimension_numbers = #tpu.dot_dimension_numbers<[1], [0], [0], [1], [0, 0, 1, 1], [], []>} : vector<8x128xf32>, vector<128x5xf32>, vector<8x5xf32> -> vector<8x5xf32>
    %4 = vector.shape_cast %3 : vector<8x5xf32> to vector<1x8x5xf32>
    %cst_4 = arith.constant dense<0xFF800000> : vector<1x5xf32>
    %5 = vector.multi_reduction <maximumf>, %4, %cst_4 [1] : vector<1x8x5xf32> to vector<1x5xf32>
    %6 = vector.shape_cast %5 : vector<1x5xf32> to vector<1x1x5xf32>
    %7 = vector.broadcast %6 : vector<1x1x5xf32> to vector<1x8x5xf32>
    %8 = arith.subf %4, %7 : vector<1x8x5xf32>
    %9 = math.exp %8 : vector<1x8x5xf32>
    %cst_5 = arith.constant dense<0.000000e+00> : vector<1x5xf32>
    %10 = vector.multi_reduction <add>, %9, %cst_5 [1] : vector<1x8x5xf32> to vector<1x5xf32>
    "tpu.trace_start"() <{level = 10 : i32, message = "bsk,bsh->bkh"}> : () -> ()
    %cst_6 = arith.constant dense<0.000000e+00> : vector<1x5x128xf32>
    %11 = tpu.matmul %9, %0, %cst_6 {dimension_numbers = #tpu.dot_dimension_numbers<[1], [1], [2], [2], [0, 0, 0, 2, 1, 2], [0], [0]>} : vector<1x8x5xf32>, vector<1x8x128xf32>, vector<1x5x128xf32> -> vector<1x5x128xf32>
    "tpu.trace_stop"() : () -> ()
    %12 = tpu.reciprocal %10 : vector<1x5xf32> -> vector<1x5xf32>
    %13 = vector.shape_cast %12 : vector<1x5xf32> to vector<1x5x1xf32>
    %14 = vector.broadcast %13 : vector<1x5x1xf32> to vector<1x5x128xf32>
    %15 = arith.mulf %11, %14 : vector<1x5x128xf32>
    %c0_7 = arith.constant 0 : index
    %c0_8 = arith.constant 0 : index
    %c0_9 = arith.constant 0 : index
    %16 = vector.load %arg3[%c0_7, %c0_8, %c0_9] : memref<1x5x128xf32, #tpu.memory_space<vmem>>, vector<1x5x128xf32>
    tpu.vector_store %arg3[%c0_7, %c0_8, %c0_9], %15 {strides = array<i32>} : memref<1x5x128xf32, #tpu.memory_space<vmem>>, vector<1x5x128xf32>,
    return
  }
  func.func @transform_0(%arg0: i32) -> (i32, i32, i32) {
    %c0_i32 = arith.constant 0 : i32
    %c0_i32_0 = arith.constant 0 : i32
    %c0_i32_1 = arith.constant 0 : i32
    return %arg0, %c0_i32, %c0_i32_0 : i32, i32, i32
  }
  func.func @transform_1(%arg0: i32) -> (i32, i32) {
    %c0_i32 = arith.constant 0 : i32
    %c0_i32_0 = arith.constant 0 : i32
    %c0_i32_1 = arith.constant 0 : i32
    return %c0_i32, %c0_i32_0 : i32, i32
  }
  func.func @transform_2(%arg0: i32) -> (i32, i32, i32) {
    %c0_i32 = arith.constant 0 : i32
    %c0_i32_0 = arith.constant 0 : i32
    %c0_i32_1 = arith.constant 0 : i32
    return %arg0, %c0_i32, %c0_i32_0 : i32, i32, i32
  }
}

</mosaic_0001>

<bundles_post_ra>
// kernel: tpu_custom_call.1
= control target key start
LH: loop header
LB: loop body
LE: loop exit
PB: predicated region body
PF: predicated region fallthrough
CT: control target
= control target key end

     0   :  { %7 = vsyncpa [#allocation3], 0  ;;  %s1002_s0 = inlined_call_operand.hbm [shape: f32[2,8,128], index: 0, kind: input, shape index: {}]   ;;  %s1003_s1 = inlined_call_operand.hbm [shape: f32[128,5], index: 1, kind: input, shape index: {}]   ;;  %s1004_s2 = inlined_call_operand.hbm [shape: f32[2,5,128], index: 2, kind: output, shape index: {}]  }
   0x1   :  { %9 = vsyncpa [#allocation3 + $0x1], 0 }
   0x2   :  { %10 = vsyncpa [#allocation6], 0 }
   0x3   :  { %11 = vsyncpa [#allocation4], 0 }
   0x4   :  { %13 = vsyncpa [#allocation4 + $0x1], 0  ;;  %s802_s9 = smov 0   ;;  %s804_s10 = smov 0  }
   0x5   :  { %s806_s11 = smov 0   ;;  %s808_s12 = smov 0  }
   0x6 LB: > { %s823_s13 = sadd.s32 4294967295, %s777_s12   ;;  %s485_s14 = sadd.s32 4294967294, %s777_s12   ;;  %s777_s12 = sphi %s808_s12, %s1024_s12   ;;  %s773_s11 = sphi %s806_s11, %s1023_s11   ;;  %s769_s10 = sphi %s804_s10, %s1022_s10   ;;  %s765_s9 = sphi %s802_s9, %s1021_s9  }
   0x7   : > { %p39_p0 = scmp.ne.s32.totalorder %s769_s10, %s765_s9  ;;  %p1005_p1 = scmp.eq.s32.totalorder %s823_s13, 0 }
   0x8   : > { %p90_p3 = scmp.eq.s32.totalorder %s485_s14, 1  ;;  %p486_p5 = scmp.ge.s32.totalorder %s777_s12, 1 }
   0x9   : > { %p832_p4 = por %p1005_p1, %p39_p0  ;;  %p97_p7 = scmp.lt.s32.totalorder %s777_s12, 3 }
   0xa   : > { %p837_p6 = por %p90_p3, %p39_p0  ;;  %s779_s18 = smov [#allocation5]  }
   0xb   : > { %s1008_s15 = scalar_select %p832_p4, 1, 0 }
   0xc   : > { %s1009_s16 = scalar_select %p837_p6, 1, 0 }
   0xd   : > { %p842_p8 = pnand %p486_p5, %p97_p7  ;;  %s109_s19 = sshll.u32 %s779_s18, 4  ;;  %s846_s19 = int_to_ptr.vmem [resolvable:$true] %s109_s19 }
   0xe   : > { %s858_s21 = sadd.s32 1, %s777_s12   ;;  %s26_s22 = sadd.s32 1, %s773_s11 }
   0xf   : > { %s1010_s17 = scalar_select %p842_p8, 1, 0 }
  0x10   : > { %p591_p9 = pneg %p842_p8  ;;  %s23_s23 = ssub.s32 %s777_s12, %s858_s21 }
  0x11   : > { %s649_s26 = scalar_lea.hbm %s1003_s1, 2048 }
  0x12   : > { %p853_p11 = pnand %p591_p9, %p1005_p1  ;;  %p650_p12 = scmp.ne.s32.totalorder %s1003_s1, %s649_s26 }
  0x13   : > { %p656_p5 = scmp.lt.u32.totalorder %s649_s26, %s1003_s1 }
  0x14   : > { %p651_p13 = pneg %p853_p11 }
  0x16   : > { %p652_p0 = pnand %p651_p13, %p650_p12 }
  0x18   : > { %p653_p3 = pneg %p652_p0 }
  0x1a   : > { %p658_p7 = pnand %p656_p5, %p653_p3 }
  0x1c   : > { %661 = shalt.err (!%p658_p7)
}
  0x1d   : > { %s662_s3 = scalar_lea.vmem %s846_s19, 2048  ;;  %p670_p2 = scmp.lt.s32.totalorder %s846_s19, %s846_s19 }
  0x1e   : > { %p663_p9 = scmp.ne.s32.totalorder %s846_s19, %s662_s3  ;;  %p671_p6 = scmp.lt.s32.totalorder %s662_s3, %s662_s3 }
  0x20   : > { %p665_p10 = pnand %p663_p9, %p651_p13  ;;  %p672_p4 = por %p671_p6, %p670_p2 }
  0x22   : > { %p666_p1 = pneg %p665_p10 }
  0x24   : > { %p673_p8 = pnand %p672_p4, %p666_p1 }
  0x26   : > { %676 = shalt.err (!%p673_p8)
}
  0x27   : > { %s780_s4 = smov 128   ;;  %s781_s5 = smov 8  }
  0x28   : > { %594 = dma.hbm_to_vmem [thread:$0]  (!%p853_p11), %s1003_s1, 2048, %s846_s19, [#allocation6], %s780_s4, %s780_s4, %s781_s5  }
  0x29   : > { %p24_p2 = scmp.eq.s32.totalorder %s23_s23, 0  ;;  %p33_p1 = scmp.ne.s32.totalorder %s773_s11, %s769_s10 }
  0x2a   : > { %p34_p4 = scmp.eq.s32.totalorder %s777_s12, 0  ;;  %p604_p6 = scmp.lt.s32.totalorder %s777_s12, 2 }
  0x2b   : > { %s889_s8 = scalar_select %p24_p2, %s773_s11, %s26_s22  }
  0x2c   : > { %p35_p8 = por %p34_p4, %p33_p1  ;;  %p1012_p10 = scmp.eq.s32.totalorder %s823_s13, 1 }
  0x2d   : > { %s123_s18 = sand.u32 1, %s773_s11   ;;  %s490_s24 = sshll.u32 %s777_s12, 7 }
  0x2e   : > { %p893_p12 = por %p1012_p10, %p33_p1  ;;  %s489_s25 = sshll.u32 %s123_s18, 3 }
  0x2f   : > { %s902_s27 = scalar_lea.hbm %s1002_s0, %s490_s24  ;;  %s127_s19 = scalar_lea.vmem [#allocation2], %s489_s25 }
  0x30   : > { %s134_s22 = sshll.u32 %s127_s19, 4  ;;  %p904_p11 = pnand %p604_p6, %p35_p8  ;;  %s908_s22 = int_to_ptr.vmem [resolvable:$true] %s134_s22 }
  0x31   : > { %s124_s28 = scalar_lea.sflag [#allocation3], %s123_s18  ;;  %s677_s29 = scalar_lea.hbm %s902_s27, 128 }
  0x32   : > { %p678_p13 = scmp.ne.s32.totalorder %s902_s27, %s677_s29  ;;  %p679_p0 = pneg %p904_p11 }
  0x33   : > { %s682_s4 = scalar_lea.hbm %s1002_s0, 256  ;;  %p683_p7 = scmp.lt.u32.totalorder %s902_s27, %s1002_s0 }
  0x34   : > { %p680_p3 = pnand %p679_p0, %p678_p13  ;;  %p684_p9 = scmp.lt.u32.totalorder %s682_s4, %s677_s29 }
  0x35   : > { %p686_p1 = scmp.lt.u32.totalorder %s677_s29, %s902_s27 }
  0x36   : > { %p681_p5 = pneg %p680_p3  ;;  %p685_p2 = por %p684_p9, %p683_p7 }
  0x38   : > { %p687_p4 = por %p686_p1, %p685_p2 }
  0x3a   : > { %p688_p6 = pnand %p687_p4, %p681_p5 }
  0x3c   : > { %691 = shalt.err (!%p688_p6)
}
  0x3d   : > { %s692_s7 = scalar_lea.vmem %s908_s22, 128  ;;  %s782_s18 = smov [#allocation2]  }
  0x3e   : > { %p693_p8 = scmp.ne.s32.totalorder %s908_s22, %s692_s7  ;;  %s697_s24 = sshll.u32 %s782_s18, 4  ;;  %s698_s24 = int_to_ptr.vmem [resolvable:$false] %s697_s24 }
  0x3f   : > { %s699_s25 = scalar_lea.vmem %s698_s24, 256  ;;  %p700_p3 = scmp.lt.s32.totalorder %s908_s22, %s698_s24 }
  0x40   : > { %p695_p10 = pnand %p693_p8, %p679_p0  ;;  %p701_p7 = scmp.lt.s32.totalorder %s699_s25, %s692_s7 }
  0x42   : > { %p696_p13 = pneg %p695_p10  ;;  %p702_p9 = por %p701_p7, %p700_p3 }
  0x44   : > { %p703_p2 = pnand %p702_p9, %p696_p13 }
  0x46   : > { %706 = shalt.err (!%p703_p2)
}
  0x47   : > { %598 = dma.hbm_to_vmem [thread:$0]  (!%p904_p11), %s902_s27, 128, %s908_s22, %s124_s28  }
  0x48   : > { %p1015_p5 = scmp.ne.s32.totalorder %s1010_s17, 0 }
  0x49   : > { %s938_s20 = sand.u32 (!%p1015_p5), 1, %s769_s10   ;;  %p1016_p0 = scmp.ne.s32.totalorder (!%p1015_p5), %s1008_s15, 0 }
  0x4a   : > { %143 = sbr.rel (%p1015_p5) target bundleno = 716 (0x2cc), region = 28  ;;  %s492_s26 = sshll.u32 (!%p1015_p5), %s938_s20, 3 }
  0x4b   : > { %s146_s19 = scalar_lea.sflag (!%p1015_p5), [#allocation3], %s938_s20  ;;  %s149_s29 = scalar_lea.vmem (!%p1015_p5), [#allocation2], %s492_s26 }
  0x51   : > { %752 = dma.done.wait (%p1016_p0), %s146_s19, 128  }
  0x52   : > { %754 = vsyncadd (%p1016_p0), %s146_s19, 4294967168  ;;  %p1017_p11 = scmp.eq.s32.totalorder %s823_s13, 0 }
  0x54   : > { %756 = dma.done.wait (%p1017_p11), [#allocation6], 2048   ;;  %p1018_p1 = pmov %p1017_p11 }
  0x55   : > { %v783_v0 = vmov 0.0|0.0   ;;  %vm784_vm0 = vmmov 0   ;;  %v785_v1 = vmov 0.0   ;;  %v175_v2 = vld [vmem:[#allocation5] sm:$0xff]  ;;  %v176_v3 = vld [vmem:[#allocation5 + $0x8] sm:$0xff]  ;;  %v177_v4 = vld [vmem:[#allocation5 + $0x10] sm:$0xff] }
  0x56   : > { %758 = vsyncadd (%p1018_p1), [#allocation6], 4294965248  ;;  %559 = vmatprep.subr.bf16.mxu0 %v783_v0  ;;  %551 = vmatprep.mubr.msk.f32.mxu0 %vm784_vm0, %v785_v1  ;;  %v560_v5 = vpack.c.bf16 %v176_v3, %v175_v2  ;;  %v178_v6 = vld [vmem:[#allocation5 + $0x18] sm:$0xff]  ;;  %v179_v8 = vld [vmem:[#allocation5 + $0x20] sm:$0xff]  ;;  %vm261_vm1 = vcmask 39936   ;;  %vm311_vm2 = vcmask 64512  }
  0x57   : > { %554 = vmatprep.subr.mxu1 %v785_v1  ;;  %556 = vmatprep.mubr.msk.f32.mxu1 %vm784_vm0, %v785_v1  ;;  %v563_v7 = vpack.c.bf16 %v178_v6, %v177_v4  ;;  %v180_v9 = vld [vmem:[#allocation5 + $0x28] sm:$0xff]  ;;  %v174_v10 = vld [vmem:[%s149_s29] sm:$0xff]  ;;  %v183_v15 = vld [vmem:[#allocation5 + $0x40] sm:$0xff]  ;;  %s497_s15 = sshll.u32 %s823_s13, 7  ;;  %s173_s17 = scalar_lea.vmem [#allocation7], %s492_s26 }
  0x58   : > { %561 = vmatpush3.bf16.msra.mxu0 %v560_v5  ;;  %555 = vmatpush3.msra.mxu1 %v174_v10  ;;  %v566_v11 = vpack.c.bf16 %v180_v9, %v179_v8  ;;  %v181_v12 = vld [vmem:[#allocation5 + $0x30] sm:$0xff]  ;;  %v182_v13 = vld [vmem:[#allocation5 + $0x38] sm:$0xff]  ;;  %v184_v16 = vld [vmem:[#allocation5 + $0x48] sm:$0xff]  ;;  %s405_s27 = sshll.u32 %s173_s17, 4  ;;  %s958_s28 = scalar_lea.hbm %s1004_s2, %s497_s15  ;;  %s960_s27 = int_to_ptr.vmem [resolvable:$true] %s405_s27 }
  0x59   : > { %562 = vmatprep.subr.bf16.mxu0 %v783_v0  ;;  %v569_v14 = vpack.c.bf16 %v182_v13, %v181_v12  ;;  %v572_v17 = vpack.c.bf16 %v184_v16, %v183_v15  ;;  %v185_v18 = vld [vmem:[#allocation5 + $0x50] sm:$0xff]  ;;  %v186_v19 = vld [vmem:[#allocation5 + $0x58] sm:$0xff]  ;;  %v187_v21 = vld [vmem:[#allocation5 + $0x60] sm:$0xff]  ;;  %s392_s30 = scalar_lea.sflag [#allocation4], %s938_s20  ;;  %s707_s13 = scalar_lea.vmem %s960_s27, 128 }
  0x5a   : > { %v575_v20 = vpack.c.bf16 %v186_v19, %v185_v18  ;;  %v188_v22 = vld [vmem:[#allocation5 + $0x68] sm:$0xff]  ;;  %v189_v24 = vld [vmem:[#allocation5 + $0x70] sm:$0xff]  ;;  %v190_v25 = vld [vmem:[#allocation5 + $0x78] sm:$0xff]  ;;  %p708_p4 = scmp.ne.s32.totalorder %s960_s27, %s707_s13  ;;  %s786_s3 = smov [#allocation7]  }
  0x5b   : > { %v578_v23 = vpack.c.bf16 %v188_v22, %v187_v21  ;;  %v581_v26 = vpack.c.bf16 %v190_v25, %v189_v24  ;;  %s711_s4 = sshll.u32 %s786_s3, 4  ;;  %s712_s4 = int_to_ptr.vmem [resolvable:$false] %s711_s4 }
  0x5c   : > { %564 = vmatpush3.bf16.msra.mxu0 %v563_v7  ;;  %p709_p6 = pnand %p708_p4, %p893_p12  ;;  %s713_s5 = scalar_lea.vmem %s712_s4, 256 }
  0x5d   : > { %565 = vmatprep.subr.bf16.mxu0 %v783_v0  ;;  %p714_p10 = scmp.lt.s32.totalorder %s960_s27, %s712_s4  ;;  %p715_p13 = scmp.lt.s32.totalorder %s713_s5, %s707_s13 }
  0x5e   : > { %p710_p8 = pneg %p709_p6 }
  0x5f   : > { %p716_p3 = por %p715_p13, %p714_p10 }
  0x60   : > { %567 = vmatpush3.bf16.msra.mxu0 %v566_v11 }
  0x61   : > { %568 = vmatprep.subr.bf16.mxu0 %v783_v0  ;;  %p717_p7 = pnand %p716_p3, %p710_p8 }
  0x64   : > { %570 = vmatpush3.bf16.msra.mxu0 %v569_v14 }
  0x65   : > { %571 = vmatprep.subr.bf16.mxu0 %v783_v0 }
  0x68   : > { %573 = vmatpush3.bf16.msra.mxu0 %v572_v17 }
  0x69   : > { %574 = vmatprep.subr.bf16.mxu0 %v783_v0 }
  0x6c   : > { %576 = vmatpush3.bf16.msra.mxu0 %v575_v20 }
  0x6d   : > { %577 = vmatprep.subr.bf16.mxu0 %v783_v0 }
  0x70   : > { %579 = vmatpush3.bf16.msra.mxu0 %v578_v23 }
  0x71   : > { %580 = vmatprep.subr.bf16.mxu0 %v783_v0 }
  0x74   : > { %582 = vmatpush3.bf16.msra.mxu0 %v581_v26 }
  0x77   : > { %552 = vmatmul.mubr.f32.vlgmr.msra.gmra.mrb[0].mxu0 %v174_v10 }
 0x14a   : > { %v257_v27 = vpop.f32.mrb[0].mxu0 }
 0x14b   : > { %v262_v28 = vsel %vm261_vm1, %v257_v27, -inf  ;;  %v553_v29 = vpop.f32.mrb[1].mxu0 }
 0x14c   : > { %v263_v30 = vrot.slane %v262_v28, 4 }
 0x14e   : > { %v264_v31 = vmax.f32 %v262_v28, %v263_v30 }
 0x150   : > { %v265_v32 = vrot.slane %v264_v31, 2 }
 0x152   : > { %v266_v33 = vmax.f32 %v264_v31, %v265_v32 }
 0x154   : > { %v267_v34 = vrot.slane %v266_v33, 1 }
 0x156   : > { %v268_v35 = vmax.f32 %v266_v33, %v267_v34 }
 0x158   : > { %v269_v36 = vsub.f32 %v257_v27, %v268_v35 }
 0x15a   : > { %v270_v37 = vmul.f32 1.442695, %v269_v36 }
 0x15c   : > { %645 = vpow2.f32 %v270_v37 }
 0x166   : > { %v646_v38 = vpop.eup %645 }
 0x167   : > { %279 = vxpose.xlu0.b32.start.end [1/1] (short) (narrow) %v646_v38, 8  ;;  %v272_v39 = vsel %vm261_vm1, %v646_v38, 0.0 }
 0x168   : > { %v273_v40 = vrot.slane %v272_v39, 4 }
 0x16a   : > { %v274_v41 = vadd.f32 %v273_v40, %v272_v39 }
 0x16c   : > { %v275_v42 = vrot.slane %v274_v41, 2 }
 0x16e   : > { %v276_v43 = vadd.f32 %v275_v42, %v274_v41 }
 0x170   : > { %v277_v44 = vrot.slane %v276_v43, 1 }
 0x172   : > { %v278_v45 = vadd.f32 %v277_v44, %v276_v43 }
 0x174   : > { %647 = vrcp.f32 %v278_v45 }
 0x17e   : > { %v648_v46 = vpop.eup %647 }
 0x190   : > { %387 = vbcast.lane.b32.xlu0 %v648_v46, 256 }
 0x1e7   : > { %v295_v47 = vpop.trf.xlu0 }
 0x1e8   : > { %557 = vmatmul.mubr.msk.f32.vlgmr.msra.gmra.mrb[0].mxu1 %vm311_vm2, %v295_v47 }
 0x202   : > { %v388_v48 = vpop.permute.xlu0 %387 }
 0x2bb   : > { %v381_v49 = vpop.f32.mrb[0].mxu1 }
 0x2bc   : > { %v389_v50 = vmul.f32 %v388_v48, %v381_v49  ;;  %v558_v51 = vpop.f32.mrb[1].mxu1 }
 0x2be   : > { %390 = vst [vmem:[%s173_s17] sm:$0x1f] %v389_v50 }
 0x2bf   : > { %720 = shalt.err (!%p717_p7)
}
 0x2c0   : > { %s721_s6 = scalar_lea.hbm %s958_s28, 128  ;;  %s725_s24 = scalar_lea.hbm %s1004_s2, 256 }
 0x2c1   : > { %p722_p9 = scmp.ne.s32.totalorder %s958_s28, %s721_s6  ;;  %p726_p0 = scmp.lt.u32.totalorder %s958_s28, %s1004_s2 }
 0x2c2   : > { %p727_p11 = scmp.lt.u32.totalorder %s725_s24, %s721_s6  ;;  %p729_p4 = scmp.lt.u32.totalorder %s721_s6, %s958_s28 }
 0x2c3   : > { %p723_p2 = pnand %p722_p9, %p893_p12 }
 0x2c4   : > { %p728_p1 = por %p727_p11, %p726_p0 }
 0x2c5   : > { %p724_p5 = pneg %p723_p2 }
 0x2c6   : > { %p730_p6 = por %p729_p4, %p728_p1 }
 0x2c8   : > { %p731_p8 = pnand %p730_p6, %p724_p5 }
 0x2ca   : > { %734 = shalt.err (!%p731_p8)
}
 0x2cb   : > { %589 = dma.vmem_to_hbm [thread:$0]  (%p893_p12), %s960_s27, 128, %s958_s28, %s392_s30  }
 0x2cc PF: > { %s417_s26 = sand.u32 1, %s765_s9   ;;  %p1019_p10 = scmp.ne.s32.totalorder %s1009_s16, 0 }
 0x2cd   : > { %p1020_p13 = scmp.ge.s32.totalorder %s777_s12, 2  ;;  %s418_s19 = scalar_lea.sflag [#allocation4], %s417_s26 }
 0x2cf   : > { %p600_p3 = pnand %p1020_p13, %p1019_p10 }
 0x2d1   : > { %760 = dma.done.wait (!%p600_p3), %s418_s19, 128  }
 0x2d2   : > { %762 = vsyncadd (!%p600_p3), %s418_s19, 4294967168  ;;  %p16_p7 = scmp.ge.s32.totalorder %s858_s21, 4   ;;  %s1021_s9 = smov %s769_s10 }
 0x2d3   : > { %s1022_s10 = smov %s773_s11  ;;  %s1023_s11 = smov %s889_s8 }
 0x2d4   : > { %s1024_s12 = smov %s858_s21  ;;  %18 = sbr.rel (!%p16_p7) target bundleno = 6 (0x6), region = 77 }
 0x2db   :  { %423 = vsyncpa [#allocation3], 1 }
 0x2dc   :  { %425 = vsyncpa [#allocation3 + $0x1], 1 }
 0x2dd   :  { %426 = vsyncpa [#allocation6], 1 }
 0x2de   :  { %427 = vsyncpa [#allocation4], 1 }
 0x2df   :  { %429 = vsyncpa [#allocation4 + $0x1], 1 }

</bundles_post_ra>
